<compile_context>
chip_gen: v7x
topology: tpu7x:2x2x1
jax: 0.10.0
libtpu: 0.0.40
codegen_flags: <defaults>
</compile_context>

<pallas_src>
import functools

import jax
import jax.numpy as jnp
from jax.experimental import pallas as pl
from jax.experimental.pallas import tpu as pltpu


def _round_up(x: int, m: int) -> int:
    return ((x + m - 1) // m) * m


def _choose_tile(dim: int, cap: int, granule: int):
    """Largest block <= cap that equals `dim` or divides it (multiple of granule)."""
    cap = max(cap, granule)
    if dim <= cap:
        return dim                      # full-extent block, no padding needed
    t = (cap // granule) * granule
    while t >= granule:
        if dim % t == 0:
            return t
        t -= granule
    return None                         # no clean divisor -> caller pads


def _tile_and_pad(dim: int, cap: int, granule: int):
    t = _choose_tile(dim, cap, granule)
    if t is not None:
        return t, dim
    t = max((cap // granule) * granule, granule)
    return t, _round_up(dim, t)


def _linear_kernel_multi_k(x_ref, w_ref, b_ref, o_ref, *, compute_dtype):
    """Multi-K-step tile: o_ref (f32) is VMEM-resident across grid axis 2.

    x_ref : (tm, tk)  activation tile
    w_ref : (tk, tn)  weight tile (pre-transposed, (in, out) layout)
    b_ref : (1,  tn)  bias tile (constant across K)
    o_ref : (tm, tn)  f32 output tile, doubles as the accumulator
    """
    k = pl.program_id(2)

    @pl.when(k == 0)
    def _init():
        # Seed the accumulator with the bias (added once; dot is linear).
        o_ref[...] = jnp.broadcast_to(b_ref[...].astype(o_ref.dtype), o_ref.shape)

    o_ref[...] += jnp.dot(
        x_ref[...].astype(compute_dtype),
        w_ref[...].astype(compute_dtype),
        preferred_element_type=jnp.float32,
    )


def _linear_kernel_single_k(x_ref, w_ref, b_ref, o_ref, *, compute_dtype):
    """Fused single-K-step tile: no init / accumulate round-trip."""
    acc = jnp.dot(
        x_ref[...].astype(compute_dtype),
        w_ref[...].astype(compute_dtype),
        preferred_element_type=jnp.float32,
    )
    o_ref[...] = (acc + b_ref[...].astype(jnp.float32)).astype(o_ref.dtype)


def lr_forward(
    x,
    weight_t,
    bias,
    *,
    compute_dtype=jnp.bfloat16,
    tm_cap=512,
    tn_cap=512,
    tk_cap=1024,
):
    """Pallas equivalent of nn.Linear(input_size, output_size)(x).

    x:        (B, input_size)            float32
    weight_t: (input_size, output_size)  float32 -- W.T, pre-transposed ONCE at
                                         param-prep time (outside the hot path)
    bias:     (output_size,)             float32
    returns   (B, output_size)           float32
    """
    B, K = x.shape
    K_w, N = weight_t.shape
    assert K == K_w, "weight in_features mismatch"
    assert bias.shape == (N,)

    # bf16 packs 2 rows per sublane -> prefer tm multiples of 16 on that path.
    m_granule = 16 if jnp.dtype(compute_dtype) == jnp.dtype(jnp.bfloat16) else 8

    tm, Mp = _tile_and_pad(B, tm_cap, m_granule)
    tn, Np = _tile_and_pad(N, tn_cap, 128)
    tk, Kp = _tile_and_pad(K, tk_cap, 128)

    # v7x has 2 TensorCores: if the whole output is one tile but N is big,
    # split the N axis so both cores get a "parallel" block.
    if (Mp // tm) * (Np // tn) == 1 and tn >= 256 and (tn // 2) % 128 == 0:
        tn //= 2

    # Zero-padding is only a fallback for awkward remainders (zeros along K
    # contribute nothing; padded M/N rows/cols are sliced off below).
    # TODO(synk): mask the ragged last K tile in-kernel instead of padding.
    if (Mp, Kp) != (B, K):
        x = jnp.pad(x, ((0, Mp - B), (0, Kp - K)))
    if (Kp, Np) != (K, N):
        weight_t = jnp.pad(weight_t, ((0, Kp - K), (0, Np - N)))
    bias2d = bias.reshape(1, N)
    if Np != N:
        bias2d = jnp.pad(bias2d, ((0, 0), (0, Np - N)))

    grid = (Mp // tm, Np // tn, Kp // tk)
    kernel = _linear_kernel_single_k if grid[2] == 1 else _linear_kernel_multi_k
    kernel = functools.partial(kernel, compute_dtype=compute_dtype)

    itemsize = jnp.dtype(x.dtype).itemsize
    out = pl.pallas_call(
        kernel,
        out_shape=jax.ShapeDtypeStruct((Mp, Np), jnp.float32),
        grid=grid,
        in_specs=[
            pl.BlockSpec((tm, tk), lambda i, j, k: (i, k)),   # x tile
            pl.BlockSpec((tk, tn), lambda i, j, k: (k, j)),   # W^T tile (in, out)
            pl.BlockSpec((1, tn), lambda i, j, k: (0, j)),    # bias: constant over K
        ],
        out_specs=pl.BlockSpec((tm, tn), lambda i, j, k: (i, j)),
        compiler_params=pltpu.CompilerParams(
            dimension_semantics=("parallel", "parallel", "arbitrary"),
            vmem_limit_bytes=32 * 1024 * 1024,
        ),
        cost_estimate=pl.CostEstimate(
            flops=2 * Mp * Np * Kp,
            transcendentals=0,
            bytes_accessed=(Mp * Kp + Kp * Np + Np + Mp * Np) * itemsize,
        ),
    )(x, weight_t, bias2d)

    if (Mp, Np) != (B, N):
        out = out[:B, :N]
    return out


if __name__ == "__main__":
    key = jax.random.PRNGKey(0)
    kx, kw, kb, kx2, kw2, kb2 = jax.random.split(key, 6)

    # --- Case 1: the LR module's toy shapes (single tile, single K step). ---
    batch, input_size, output_size = 8, 32, 16
    bound = 1.0 / (input_size ** 0.5)
    weight = jax.random.uniform(
        kw, (output_size, input_size), jnp.float32, -bound, bound
    )
    bias = jax.random.uniform(kb, (output_size,), jnp.float32, -bound, bound)
    x = jax.random.normal(kx, (batch, input_size), jnp.float32)

    # One-time param prep (outside the hot path): W -> W^T.
    weight_t = jnp.asarray(weight.T)

    y = jax.block_until_ready(lr_forward(x, weight_t, bias))
    assert y.shape == (batch, output_size)

    # Reference using the same bf16-on-MXU compute path (f32 accumulation).
    y_ref = (
        jnp.dot(
            x.astype(jnp.bfloat16),
            weight_t.astype(jnp.bfloat16),
            preferred_element_type=jnp.float32,
        )
        + bias
    )
    assert jnp.allclose(y, y_ref, atol=1e-4, rtol=1e-4)
    # Loose sanity check against the full-f32 math (bf16 inputs on the MXU).
    assert jnp.allclose(y, x @ weight.T + bias, atol=5e-2, rtol=5e-2)

    # --- Case 2: exercise the multi-K / multi-tile accumulation path ---
    B2, K2, N2 = 32, 256, 256
    bound2 = 1.0 / (K2 ** 0.5)
    w2 = jax.random.uniform(kw2, (N2, K2), jnp.float32, -bound2, bound2)
    b2 = jax.random.uniform(kb2, (N2,), jnp.float32, -bound2, bound2)
    x2 = jax.random.normal(kx2, (B2, K2), jnp.float32)

    y2 = jax.block_until_ready(
        lr_forward(x2, jnp.asarray(w2.T), b2, tm_cap=16, tn_cap=128, tk_cap=128)
    )
    y2_ref = (
        jnp.dot(
            x2.astype(jnp.bfloat16),
            w2.T.astype(jnp.bfloat16),
            preferred_element_type=jnp.float32,
        )
        + b2
    )
    assert y2.shape == (B2, N2)
    assert jnp.allclose(y2, y2_ref, atol=1e-4, rtol=1e-4)

    print("KERNEL_OK")
</pallas_src>

<mosaic_0001>
module attributes {stable_mosaic.version = 11 : i64} {
  func.func @_linear_kernel_single_k(%arg0: i32, %arg1: i32, %arg2: i32, %arg3: memref<8x32xf32, #tpu.memory_space<vmem>>, %arg4: memref<32x16xf32, #tpu.memory_space<vmem>>, %arg5: memref<1x16xf32, #tpu.memory_space<vmem>>, %arg6: memref<8x16xf32, #tpu.memory_space<vmem>>) attributes {dimension_semantics = [#tpu.dimension_semantics<parallel>, #tpu.dimension_semantics<parallel>, #tpu.dimension_semantics<arbitrary>], iteration_bounds = array<i64: 1, 1, 1>, scalar_prefetch = 0 : i64, scratch_operands = 0 : i64, tpu.core_type = #tpu.core_type<tc>, window_params = [{transform_indices = @transform_0, window_bounds = array<i64: 8, 32>}, {transform_indices = @transform_1, window_bounds = array<i64: 32, 16>}, {transform_indices = @transform_2, window_bounds = array<i64: 1, 16>}, {transform_indices = @transform_3, window_bounds = array<i64: 8, 16>}]} {
    %c0 = arith.constant 0 : index
    %c0_0 = arith.constant 0 : index
    %0 = vector.load %arg3[%c0, %c0_0] : memref<8x32xf32, #tpu.memory_space<vmem>>, vector<8x32xf32>
    %1 = arith.truncf %0 : vector<8x32xf32> to vector<8x32xbf16>
    %c0_1 = arith.constant 0 : index
    %c0_2 = arith.constant 0 : index
    %2 = vector.load %arg4[%c0_1, %c0_2] : memref<32x16xf32, #tpu.memory_space<vmem>>, vector<32x16xf32>
    %3 = arith.truncf %2 : vector<32x16xf32> to vector<32x16xbf16>
    %cst = arith.constant dense<0.000000e+00> : vector<8x16xf32>
    %4 = tpu.matmul %1, %3, %cst {dimension_numbers = #tpu.dot_dimension_numbers<[1], [0], [0], [1], [0, 0, 1, 1], [], []>} : vector<8x32xbf16>, vector<32x16xbf16>, vector<8x16xf32> -> vector<8x16xf32>
    %c0_3 = arith.constant 0 : index
    %c0_4 = arith.constant 0 : index
    %5 = vector.load %arg5[%c0_3, %c0_4] : memref<1x16xf32, #tpu.memory_space<vmem>>, vector<1x16xf32>
    %6 = vector.broadcast %5 : vector<1x16xf32> to vector<8x16xf32>
    %7 = arith.addf %4, %6 : vector<8x16xf32>
    %c0_5 = arith.constant 0 : index
    %c0_6 = arith.constant 0 : index
    %8 = vector.load %arg6[%c0_5, %c0_6] : memref<8x16xf32, #tpu.memory_space<vmem>>, vector<8x16xf32>
    tpu.vector_store %arg6[%c0_5, %c0_6], %7 {strides = array<i32>} : memref<8x16xf32, #tpu.memory_space<vmem>>, vector<8x16xf32>,
    return
  }
  func.func @transform_0(%arg0: i32, %arg1: i32, %arg2: i32) -> (i32, i32) {
    %c0_i32 = arith.constant 0 : i32
    return %arg0, %arg2 : i32, i32
  }
  func.func @transform_1(%arg0: i32, %arg1: i32, %arg2: i32) -> (i32, i32) {
    %c0_i32 = arith.constant 0 : i32
    return %arg2, %arg1 : i32, i32
  }
  func.func @transform_2(%arg0: i32, %arg1: i32, %arg2: i32) -> (i32, i32) {
    %c0_i32 = arith.constant 0 : i32
    %c0_i32_0 = arith.constant 0 : i32
    return %c0_i32, %arg1 : i32, i32
  }
  func.func @transform_3(%arg0: i32, %arg1: i32, %arg2: i32) -> (i32, i32) {
    %c0_i32 = arith.constant 0 : i32
    return %arg0, %arg1 : i32, i32
  }
}

</mosaic_0001>

<bundles_post_ra>
// kernel: tpu_custom_call.1
= control target key start
LH: loop header
LB: loop body
LE: loop exit
PB: predicated region body
PF: predicated region fallthrough
CT: control target
= control target key end

     0   :  { %v131_v3 = vmov 0.0   ;;  %vm132_vm0 = vmmov 0   ;;  %s184_s0 = inlined_call_operand.vmem [shape: f32[8,32], index: 0, kind: input, shape index: {}]   ;;  %s185_s1 = inlined_call_operand.vmem [shape: f32[32,16], index: 1, kind: input, shape index: {}]   ;;  %s186_s2 = inlined_call_operand.vmem [shape: f32[1,16], index: 2, kind: input, shape index: {}]   ;;  %s187_s3 = inlined_call_operand.hbm [shape: f32[8,16], index: 3, kind: output, shape index: {}]  }
   0x1   :  { %v18_v0 = vld [vmem:[%s185_s1] sm:$0xff]  ;;  %v19_v1 = vld [vmem:[%s185_s1 + $0x8] sm:$0xff]  ;;  %v20_v2 = vld [vmem:[%s185_s1 + $0x10] sm:$0xff]  ;;  %96 = vmatprep.subr.bf16.mxu0 %v131_v3  ;;  %100 = vmatprep.mubr.msk.bf16.mxu0 %vm132_vm0, %v131_v3 }
   0x2   :  { %v22_v4 = vpack.c.bf16 %v19_v1, %v18_v0  ;;  %v21_v5 = vld [vmem:[%s185_s1 + $0x18] sm:$0xff] }
   0x3   :  { %8 = vsyncpa [#allocation3], 0  ;;  %v23_v6 = vpack.c.bf16 %v21_v5, %v20_v2  ;;  %v16_v7 = vld [vmem:[%s184_s0] sm:$0xff]  ;;  %vm31_vm1 = vcmask 261120   ;;  %s133_s24 = smov [#allocation2]   ;;  %vm75_vm2 = vcmask 130048  }
   0x4   :  { %97 = vmatpush3.bf16.msra.mxu0 %v22_v4  ;;  %v17_v8 = vpack.c.bf16 %v16_v7, %v16_v7  ;;  %v91_v9 = vld [vmem:[%s186_s2] ss:$0 sm:$0xff]  ;;  %s83_s1 = sshll.u32 %s133_s24, 4  ;;  %s84_s1 = int_to_ptr.vmem [resolvable:$true] %s83_s1 }
   0x5   :  { %98 = vmatprep.subr.bf16.mxu0 %v131_v3  ;;  %s107_s0 = scalar_lea.vmem %s84_s1, 128  ;;  %p112_p1 = scmp.lt.s32.totalorder %s84_s1, %s84_s1 }
   0x6   :  { %p108_p0 = scmp.ne.s32.totalorder %s84_s1, %s107_s0  ;;  %p113_p2 = scmp.lt.s32.totalorder %s107_s0, %s107_s0 }
   0x8   :  { %99 = vmatpush3.bf16.msra.mxu0 %v23_v6  ;;  %p114_p3 = por %p113_p2, %p112_p1 }
   0xa   :  { %p115_p4 = pnand %p114_p3, %p108_p0 }
   0xb   :  { %101 = vmatmul.mubr.msk.bf16.vlgmr.msra.gmra.mrb[0].mxu0 %vm31_vm1, %v17_v8 }
  0xde   :  { %v69_v10 = vpop.f32.mrb[0].mxu0 }
  0xdf   :  { %v70_v11 = vadd.f32 %v91_v9, %v69_v10  ;;  %v102_v12 = vpop.f32.mrb[1].mxu0 }
  0xe0   :  { %v72_v13 = vpop.f32.mrb[2].mxu0 }
  0xe1   :  { %v103_v14 = vpop.f32.mrb[3].mxu0  ;;  %76 = vst.msk [vmem:[#allocation2] sm:$0xff] %vm75_vm2, %v70_v11 }
  0xe2   :  { %118 = shalt.err (!%p115_p4)
}
  0xe3   :  { %s119_s2 = scalar_lea.hbm %s187_s3, 128 }
  0xe4   :  { %p120_p5 = scmp.ne.s32.totalorder %s187_s3, %s119_s2  ;;  %p123_p6 = scmp.lt.u32.totalorder %s119_s2, %s187_s3 }
  0xe6   :  { %p125_p7 = pnand %p123_p6, %p120_p5 }
  0xe8   :  { %128 = shalt.err (!%p125_p7)
}
  0xe9   :  { %86 = dma.vmem_to_hbm [thread:$0]  %s84_s1, 128, %s187_s3, [#allocation3]  }
  0xea   :  { %129 = dma.done.wait [#allocation3], 128  }
  0xeb   :  { %130 = vsyncadd [#allocation3], 4294967168 }
  0xec   :  { %90 = vsyncpa [#allocation3], 1 }

</bundles_post_ra>
